<compile_context>
chip_gen: v7x
topology: tpu7x:2x2x1
jax: 0.10.0
libtpu: 0.0.40
codegen_flags: <defaults>
</compile_context>

<pallas_src>
import math

import jax
import jax.numpy as jnp
from jax.experimental import pallas as pl
from jax.experimental.pallas import tpu as pltpu

_SUBLANE = 8
_LANE = 128


# ---------------------------------------------------------------------------
# Gaussian weights (static python floats; matches torchvision's default sigma)
# ---------------------------------------------------------------------------
def _gaussian_kernel1d(kernel_size: int):
    sigma = 0.3 * ((kernel_size - 1) * 0.5 - 1) + 0.8
    half = (kernel_size - 1) * 0.5
    if kernel_size > 1:
        xs = [-half + i * (2.0 * half / (kernel_size - 1)) for i in range(kernel_size)]
    else:
        xs = [0.0]
    pdf = [math.exp(-0.5 * (v / sigma) ** 2) for v in xs]
    s = sum(pdf)
    return [p / s for p in pdf]


# ---------------------------------------------------------------------------
# In-kernel separable convolution with reflect boundaries (no padded buffers)
# ---------------------------------------------------------------------------
def _circular_shift(x, s, axis):
    """Circular shift by `s` along `axis`.

    The caller only ever consumes the *sum* of the `s` and `n - s` shifts, so
    the rotation direction is irrelevant.  We use the XLU rotate (pltpu.roll)
    when the axis is the 128-lane axis and tile aligned (the case that matters
    for real image widths); otherwise a two-slice rotation, which is always
    supported and cheap for sublane shifts / tiny widths (e.g. the 16-wide
    demo planes).
    TODO(synk): widen pltpu.roll usage to unaligned / sublane axes once the
    rotate lowering is validated for those cases on the target toolchain.
    """
    n = x.shape[axis]
    s = s % n
    if s == 0:
        return x
    if axis == x.ndim - 1 and n % _LANE == 0:
        return pltpu.roll(x, shift=s, axis=axis)
    a = jax.lax.slice_in_dim(x, s, n, axis=axis)
    b = jax.lax.slice_in_dim(x, 0, s, axis=axis)
    return jnp.concatenate([a, b], axis=axis)


def _conv1d_reflect(x, k1d, pad, axis):
    """Symmetric 1-D convolution along `axis` with reflect boundary handling.

    For each tap distance o we add  k[o] * (shift(+o) + shift(-o))  where the
    shifts are circular; the (statically known) border rows/columns whose +o
    or -o neighbour falls outside the axis are then overwritten with the
    explicit reflected value via a broadcasted_iota mask.  Every intermediate
    keeps the aligned shape of `x` -- no (n + 2*pad) concat buffers.
    """
    axis = axis % x.ndim
    n = x.shape[axis]
    acc = k1d[pad] * x
    if pad == 0:
        return acc

    idx_shape = [1] * x.ndim
    idx_shape[axis] = n
    idx = jax.lax.broadcasted_iota(jnp.int32, tuple(idx_shape), axis)

    def line(i):  # one row / column at static index i (broadcasts along axis)
        return jax.lax.slice_in_dim(x, i, i + 1, axis=axis)

    def reflect(i):  # reflect a static index into [0, n)   (requires pad < n)
        if i < 0:
            return -i
        if i >= n:
            return 2 * n - 2 - i
        return i

    for o in range(1, pad + 1):
        w = k1d[pad + o]  # == k1d[pad - o]: the Gaussian kernel is symmetric
        pair = _circular_shift(x, o, axis) + _circular_shift(x, n - o, axis)
        # Border fixups: positions whose +o or -o neighbour is out of range.
        for p in sorted(set(range(o)) | set(range(n - o, n))):
            fix = line(reflect(p + o)) + line(reflect(p - o))
            pair = jnp.where(idx == p, fix, pair)
        acc = acc + w * pair
    return acc


def _blur_f32(x2d, k1d, pad):
    xv = x2d.astype(jnp.float32)
    tmp = _conv1d_reflect(xv, k1d, pad, axis=1)   # along W (lane axis)
    return _conv1d_reflect(tmp, k1d, pad, axis=0)  # along H (sublane axis)


def _finalize(acc, is_int, dtype):
    if is_int:
        acc = jnp.round(acc)  # torchvision rounds before casting back to int
    return acc.astype(dtype)


# ---------------------------------------------------------------------------
# VMEM sizing (per-generation) and tiling heuristics
# ---------------------------------------------------------------------------
def _vmem_limit_bytes():
    """Scoped-VMEM limit to request: ~half of physical, capped at 48 MiB
    (v7x has 64 MiB physical; v5e/v6e have 128 MiB)."""
    try:
        phys = pltpu.get_tpu_info().vmem_capacity_bytes
    except Exception:
        phys = 64 * 1024 * 1024  # conservative (v7x)
    return int(min(phys // 2, 48 * 1024 * 1024))


def _round_up(x, m):
    return ((x + m - 1) // m) * m


def _working_set_bytes(rows_in, rows_out, w, in_bytes, out_bytes):
    # double-buffered input window + double-buffered output block + ~6 live
    # f32 temporaries of the two convolution passes
    return (2 * rows_in * w * in_bytes
            + 2 * rows_out * w * out_bytes
            + 6 * rows_in * w * 4)


def _choose_strip_rows(h, w, in_bytes, out_bytes, pad, budget):
    """Largest strip height TH (multiple of 8, divides H, >= 2*halo) whose
    halo'd working set fits the per-step VMEM budget."""
    g = _round_up(max(pad, 1), _SUBLANE)  # halo rows per side (>= pad)
    if h % _SUBLANE:
        return None, g
    cands = [th for th in range(2 * g, h // 2 + 1, _SUBLANE) if h % th == 0]
    if not cands:
        return None, g
    fitting = [th for th in cands
               if _working_set_bytes(th + 2 * g, th, w, in_bytes, out_bytes) <= budget]
    return (max(fitting) if fitting else min(cands)), g


# ---------------------------------------------------------------------------
# Path 1: one whole (H, W) plane per grid step (small / medium planes)
# ---------------------------------------------------------------------------
def _blur_whole_planes(x_flat, k1d, pad, is_int, vmem_limit, cost):
    NC, H, W = x_flat.shape

    def kernel(x_ref, o_ref):
        acc = _blur_f32(x_ref[...], k1d, pad)
        o_ref[...] = _finalize(acc, is_int, o_ref.dtype)

    # One plane per step: grid == NC steps so the automatic double-buffering
    # always has DMA to overlap, the step count divides the work exactly, and
    # the "parallel" axis shards across both v7x TensorCores.
    # (Per-step overhead is ~0.35 us; only pathological batches of thumbnail
    #  planes would notice.)
    # NOTE: sweep pipeline_mode=pl.Buffered(3) on the input spec if a trace
    # still shows exposed input DMA on this bandwidth-bound stream.
    return pl.pallas_call(
        kernel,
        out_shape=jax.ShapeDtypeStruct((NC, H, W), x_flat.dtype),
        grid=(NC,),
        in_specs=[pl.BlockSpec((None, H, W), lambda i: (i, 0, 0))],
        out_specs=pl.BlockSpec((None, H, W), lambda i: (i, 0, 0)),
        compiler_params=pltpu.CompilerParams(
            dimension_semantics=("parallel",),
            vmem_limit_bytes=vmem_limit),
        cost_estimate=cost,
    )(x_flat)


# ---------------------------------------------------------------------------
# Path 2: halo'd H-strips with manual double-buffered DMA (large planes)
# ---------------------------------------------------------------------------
def _blur_row_strips(x_flat, k1d, pad, is_int, th, g, vmem_limit, cost):
    NC, H, W = x_flat.shape
    hb = th + 2 * g          # halo'd input window height (rows)
    S = H // th              # strips per plane (>= 2)
    n_steps = NC * S

    def kernel(x_hbm, o_ref, buf, sem):
        i = pl.program_id(0)          # plane
        j = pl.program_id(1)          # strip within the plane
        t = i * S + j                 # linear step index
        slot = t % 2

        def window_start(strip):
            # Clamp keeps the DMA window inside the plane; the kept rows are
            # then offset by `strip*th - start` inside the window.
            return jnp.clip(strip * th - g, 0, H - hb)

        def start_fetch(plane, strip, slot_):
            pltpu.make_async_copy(
                x_hbm.at[plane, pl.ds(window_start(strip), hb), :],
                buf.at[slot_],
                sem.at[slot_],
            ).start()

        @pl.when(t == 0)
        def _():                      # prime the very first window
            start_fetch(i, j, slot)

        # wait for this step's window (only dst shape / semaphore matter)
        pltpu.make_async_copy(
            x_hbm.at[i, pl.ds(0, hb), :], buf.at[slot], sem.at[slot]
        ).wait()

        # prefetch the next step's window into the other buffer so the DMA
        # overlaps with this step's compute
        @pl.when(t + 1 < n_steps)
        def _():
            nj = j + 1
            wrap = nj == S
            ni = jnp.where(wrap, i + 1, i)
            nj = jnp.where(wrap, 0, nj)
            start_fetch(ni, nj, 1 - slot)

        acc = _blur_f32(buf[slot], k1d, pad)            # (hb, W) in f32
        # Rows [off, off+th) of the window are this strip's output rows.
        # Reflection at the *window* edges equals reflection at the *image*
        # edges exactly for the first/last strips (window clamped to the image
        # border) and is never reached by the kept rows of interior strips.
        off = j * th - window_start(j)                  # 0 / g / 2g
        out = jax.lax.dynamic_slice_in_dim(acc, off, th, axis=0)
        o_ref[...] = _finalize(out, is_int, o_ref.dtype)

    # NOTE: the t == 0 DMA priming assumes sequential grid execution, so both
    # axes are "arbitrary".  TODO(synk): split planes across the two v7x
    # TensorCores explicitly (per-core priming) if dual-core matters here.
    return pl.pallas_call(
        kernel,
        out_shape=jax.ShapeDtypeStruct((NC, H, W), x_flat.dtype),
        grid=(NC, S),
        in_specs=[pl.BlockSpec(memory_space=pl.ANY)],
        out_specs=pl.BlockSpec((None, th, W), lambda i, j: (i, j, 0)),
        scratch_shapes=[
            pltpu.VMEM((2, hb, W), x_flat.dtype),
            pltpu.SemaphoreType.DMA((2,)),
        ],
        compiler_params=pltpu.CompilerParams(
            dimension_semantics=("arbitrary", "arbitrary"),
            vmem_limit_bytes=vmem_limit),
        cost_estimate=cost,
    )(x_flat)


# ---------------------------------------------------------------------------
# Public entry point
# ---------------------------------------------------------------------------
def gaussian_blur(x, kernel_size=3, *, max_rows_per_block=None):
    """Gaussian-blurs x (..., H, W).  Returns same shape / dtype as input."""
    if kernel_size % 2 != 1:
        raise ValueError("torchvision gaussian_blur requires an odd kernel size")
    if x.ndim < 2:
        raise ValueError("expected an array with at least (H, W) dims")
    *lead, H, W = x.shape
    pad = kernel_size // 2
    if H <= pad or W <= pad:
        raise ValueError("reflect padding requires H > pad and W > pad")

    k1d = _gaussian_kernel1d(kernel_size)
    orig_dtype = x.dtype
    is_int = jnp.issubdtype(orig_dtype, jnp.integer)
    itemsize = jnp.dtype(orig_dtype).itemsize
    K = kernel_size

    NC = 1
    for d in lead:
        NC *= d
    x_flat = x.reshape(NC, H, W)

    limit = _vmem_limit_bytes()
    budget = (7 * limit) // 10          # leave compile-time headroom

    # ----- choose whole-plane vs halo'd H-strip tiling --------------------
    th = None
    g = 0
    if max_rows_per_block is not None and max_rows_per_block < H:
        g = _round_up(max(pad, 1), _SUBLANE)
        th = int(max_rows_per_block)
        if H % th or th % _SUBLANE or th < 2 * g:
            raise ValueError("max_rows_per_block must divide H, be a multiple "
                             "of 8 and be >= twice the halo height")
    elif _working_set_bytes(H, H, W, itemsize, itemsize) > budget:
        th, g = _choose_strip_rows(H, W, itemsize, itemsize, pad, budget)
        # TODO(synk): if H has no suitable divisor (e.g. prime H) we fall back
        # to whole-plane blocks and may exceed the VMEM budget.

    cost = pl.CostEstimate(
        flops=int(4 * K * NC * H * W),                  # separable: 2K MACs/px
        transcendentals=0,
        bytes_accessed=int(NC * H * W * 2 * itemsize),  # one read + one write
    )

    if th is None:
        out_flat = _blur_whole_planes(x_flat, k1d, pad, is_int, limit, cost)
    else:
        out_flat = _blur_row_strips(x_flat, k1d, pad, is_int, th, g, limit, cost)

    return out_flat.reshape(x.shape)


class GaussianBlurFilter:
    """JAX mirror of the PyTorch GaussianBlurFilter Processor (forward only)."""

    def __init__(self, kernelsize: int = 3):
        # Intentional divergence: the PyTorch module defaults to 2, which
        # torchvision's gaussian_blur itself rejects (must be odd).
        self.kernelsize = kernelsize

    def __call__(self, x):
        return gaussian_blur(x, self.kernelsize)


# ---------------------------------------------------------------------------
# Self-test
# ---------------------------------------------------------------------------
def _reference_blur(x, kernel_size):
    k1 = jnp.asarray(_gaussian_kernel1d(kernel_size), dtype=jnp.float32)
    pad = kernel_size // 2
    H, W = x.shape[-2], x.shape[-1]
    xp = jnp.pad(x.astype(jnp.float32),
                 ((0, 0), (0, 0), (pad, pad), (pad, pad)), mode="reflect")
    out = jnp.zeros(x.shape, jnp.float32)
    for i in range(kernel_size):
        for j in range(kernel_size):
            out = out + k1[i] * k1[j] * xp[..., i:i + H, j:j + W]
    return out.astype(x.dtype)


if __name__ == "__main__":
    key = jax.random.PRNGKey(0)
    k_small, k_big = jax.random.split(key)

    # small image batch: N=2, C=4 (RGBA-ish), 16x16 spatial -> whole-plane path
    x = jax.random.uniform(k_small, (2, 4, 16, 16), dtype=jnp.float32)
    blur = GaussianBlurFilter(kernelsize=3)
    y = blur(x)
    jax.block_until_ready(y)
    assert y.shape == x.shape and y.dtype == x.dtype
    ref = _reference_blur(x, 3)
    assert float(jnp.max(jnp.abs(y - ref))) < 1e-5

    # also exercise the halo'd H-strip path (manual double-buffered DMA,
    # lane-aligned pltpu.roll shifts) on a slightly larger, 128-wide plane
    x2 = jax.random.uniform(k_big, (1, 2, 64, 128), dtype=jnp.float32)
    y2 = gaussian_blur(x2, 3, max_rows_per_block=16)
    jax.block_until_ready(y2)
    assert y2.shape == x2.shape and y2.dtype == x2.dtype
    ref2 = _reference_blur(x2, 3)
    assert float(jnp.max(jnp.abs(y2 - ref2))) < 1e-5

    print("KERNEL_OK")
</pallas_src>

<mosaic_0001>
module attributes {stable_mosaic.version = 11 : i64} {
  func.func @kernel(%arg0: i32, %arg1: memref<1x16x16xf32, #tpu.memory_space<vmem>>, %arg2: memref<1x16x16xf32, #tpu.memory_space<vmem>>) attributes {dimension_semantics = [#tpu.dimension_semantics<parallel>], iteration_bounds = array<i64: 8>, scalar_prefetch = 0 : i64, scratch_operands = 0 : i64, tpu.core_type = #tpu.core_type<tc>, window_params = [{transform_indices = @transform_0, window_bounds = array<i64: 1, 16, 16>}, {transform_indices = @transform_1, window_bounds = array<i64: 1, 16, 16>}]} {
    %c0 = arith.constant 0 : index
    %c0_0 = arith.constant 0 : index
    %c0_1 = arith.constant 0 : index
    %0 = vector.load %arg1[%c0, %c0_0, %c0_1] : memref<1x16x16xf32, #tpu.memory_space<vmem>>, vector<1x16x16xf32>
    %1 = vector.shape_cast %0 : vector<1x16x16xf32> to vector<16x16xf32>
    %cst = arith.constant 0.522011459 : f32
    %2 = vector.broadcast %cst : f32 to vector<16x16xf32>
    %3 = arith.mulf %2, %1 : vector<16x16xf32>
    %4 = tpu.iota {dimensions = array<i32: 1>} : vector<1x16xi32>
    %5 = vector.extract_strided_slice %1 {offsets = [0, 1], sizes = [16, 15], strides = [1, 1]} : vector<16x16xf32> to vector<16x15xf32>
    %6 = vector.extract_strided_slice %1 {offsets = [0, 0], sizes = [16, 1], strides = [1, 1]} : vector<16x16xf32> to vector<16x1xf32>
    %7 = tpu.concatenate %5, %6 in 1 : vector<16x15xf32>, vector<16x1xf32> -> vector<16x16xf32>
    %8 = vector.extract_strided_slice %1 {offsets = [0, 15], sizes = [16, 1], strides = [1, 1]} : vector<16x16xf32> to vector<16x1xf32>
    %9 = vector.extract_strided_slice %1 {offsets = [0, 0], sizes = [16, 15], strides = [1, 1]} : vector<16x16xf32> to vector<16x15xf32>
    %10 = tpu.concatenate %8, %9 in 1 : vector<16x1xf32>, vector<16x15xf32> -> vector<16x16xf32>
    %11 = arith.addf %7, %10 : vector<16x16xf32>
    %12 = vector.extract_strided_slice %1 {offsets = [0, 1], sizes = [16, 1], strides = [1, 1]} : vector<16x16xf32> to vector<16x1xf32>
    %13 = vector.extract_strided_slice %1 {offsets = [0, 1], sizes = [16, 1], strides = [1, 1]} : vector<16x16xf32> to vector<16x1xf32>
    %14 = arith.addf %12, %13 : vector<16x1xf32>
    %c0_i32 = arith.constant 0 : i32
    %15 = vector.broadcast %c0_i32 : i32 to vector<1x16xi32>
    %16 = arith.cmpi eq, %4, %15 : vector<1x16xi32>
    %17 = vector.shape_cast %16 : vector<1x16xi1> to vector<1x16xi1>
    %18 = vector.broadcast %17 : vector<1x16xi1> to vector<16x16xi1>
    %19 = vector.shape_cast %14 : vector<16x1xf32> to vector<16x1xf32>
    %20 = vector.broadcast %19 : vector<16x1xf32> to vector<16x16xf32>
    %21 = arith.select %18, %20, %11 : vector<16x16xi1>, vector<16x16xf32>
    %22 = vector.extract_strided_slice %1 {offsets = [0, 14], sizes = [16, 1], strides = [1, 1]} : vector<16x16xf32> to vector<16x1xf32>
    %23 = vector.extract_strided_slice %1 {offsets = [0, 14], sizes = [16, 1], strides = [1, 1]} : vector<16x16xf32> to vector<16x1xf32>
    %24 = arith.addf %22, %23 : vector<16x1xf32>
    %c15_i32 = arith.constant 15 : i32
    %25 = vector.broadcast %c15_i32 : i32 to vector<1x16xi32>
    %26 = arith.cmpi eq, %4, %25 : vector<1x16xi32>
    %27 = vector.shape_cast %26 : vector<1x16xi1> to vector<1x16xi1>
    %28 = vector.broadcast %27 : vector<1x16xi1> to vector<16x16xi1>
    %29 = vector.shape_cast %24 : vector<16x1xf32> to vector<16x1xf32>
    %30 = vector.broadcast %29 : vector<16x1xf32> to vector<16x16xf32>
    %31 = arith.select %28, %30, %21 : vector<16x16xi1>, vector<16x16xf32>
    %cst_2 = arith.constant 0.238994271 : f32
    %32 = vector.broadcast %cst_2 : f32 to vector<16x16xf32>
    %33 = arith.mulf %32, %31 : vector<16x16xf32>
    %34 = arith.addf %3, %33 : vector<16x16xf32>
    %cst_3 = arith.constant 0.522011459 : f32
    %35 = vector.broadcast %cst_3 : f32 to vector<16x16xf32>
    %36 = arith.mulf %35, %34 : vector<16x16xf32>
    %37 = tpu.iota {dimensions = array<i32: 0>} : vector<16x1xi32>
    %38 = vector.extract_strided_slice %34 {offsets = [1, 0], sizes = [15, 16], strides = [1, 1]} : vector<16x16xf32> to vector<15x16xf32>
    %39 = vector.extract_strided_slice %34 {offsets = [0, 0], sizes = [1, 16], strides = [1, 1]} : vector<16x16xf32> to vector<1x16xf32>
    %40 = tpu.concatenate %38, %39 in 0 : vector<15x16xf32>, vector<1x16xf32> -> vector<16x16xf32>
    %41 = vector.extract_strided_slice %34 {offsets = [15, 0], sizes = [1, 16], strides = [1, 1]} : vector<16x16xf32> to vector<1x16xf32>
    %42 = vector.extract_strided_slice %34 {offsets = [0, 0], sizes = [15, 16], strides = [1, 1]} : vector<16x16xf32> to vector<15x16xf32>
    %43 = tpu.concatenate %41, %42 in 0 : vector<1x16xf32>, vector<15x16xf32> -> vector<16x16xf32>
    %44 = arith.addf %40, %43 : vector<16x16xf32>
    %45 = vector.extract_strided_slice %34 {offsets = [1, 0], sizes = [1, 16], strides = [1, 1]} : vector<16x16xf32> to vector<1x16xf32>
    %46 = vector.extract_strided_slice %34 {offsets = [1, 0], sizes = [1, 16], strides = [1, 1]} : vector<16x16xf32> to vector<1x16xf32>
    %47 = arith.addf %45, %46 : vector<1x16xf32>
    %c0_i32_4 = arith.constant 0 : i32
    %48 = vector.broadcast %c0_i32_4 : i32 to vector<16x1xi32>
    %49 = arith.cmpi eq, %37, %48 : vector<16x1xi32>
    %50 = vector.shape_cast %49 : vector<16x1xi1> to vector<16x1xi1>
    %51 = vector.broadcast %50 : vector<16x1xi1> to vector<16x16xi1>
    %52 = vector.shape_cast %47 : vector<1x16xf32> to vector<1x16xf32>
    %53 = vector.broadcast %52 : vector<1x16xf32> to vector<16x16xf32>
    %54 = arith.select %51, %53, %44 : vector<16x16xi1>, vector<16x16xf32>
    %55 = vector.extract_strided_slice %34 {offsets = [14, 0], sizes = [1, 16], strides = [1, 1]} : vector<16x16xf32> to vector<1x16xf32>
    %56 = vector.extract_strided_slice %34 {offsets = [14, 0], sizes = [1, 16], strides = [1, 1]} : vector<16x16xf32> to vector<1x16xf32>
    %57 = arith.addf %55, %56 : vector<1x16xf32>
    %c15_i32_5 = arith.constant 15 : i32
    %58 = vector.broadcast %c15_i32_5 : i32 to vector<16x1xi32>
    %59 = arith.cmpi eq, %37, %58 : vector<16x1xi32>
    %60 = vector.shape_cast %59 : vector<16x1xi1> to vector<16x1xi1>
    %61 = vector.broadcast %60 : vector<16x1xi1> to vector<16x16xi1>
    %62 = vector.shape_cast %57 : vector<1x16xf32> to vector<1x16xf32>
    %63 = vector.broadcast %62 : vector<1x16xf32> to vector<16x16xf32>
    %64 = arith.select %61, %63, %54 : vector<16x16xi1>, vector<16x16xf32>
    %cst_6 = arith.constant 0.238994271 : f32
    %65 = vector.broadcast %cst_6 : f32 to vector<16x16xf32>
    %66 = arith.mulf %65, %64 : vector<16x16xf32>
    %67 = arith.addf %36, %66 : vector<16x16xf32>
    %c0_7 = arith.constant 0 : index
    %c0_8 = arith.constant 0 : index
    %c0_9 = arith.constant 0 : index
    %68 = vector.load %arg2[%c0_7, %c0_8, %c0_9] : memref<1x16x16xf32, #tpu.memory_space<vmem>>, vector<1x16x16xf32>
    %69 = vector.shape_cast %68 : vector<1x16x16xf32> to vector<16x16xf32>
    %70 = vector.shape_cast %67 : vector<16x16xf32> to vector<1x16x16xf32>
    tpu.vector_store %arg2[%c0_7, %c0_8, %c0_9], %70 {strides = array<i32>} : memref<1x16x16xf32, #tpu.memory_space<vmem>>, vector<1x16x16xf32>,
    return
  }
  func.func @transform_0(%arg0: i32) -> (i32, i32, i32) {
    %c0_i32 = arith.constant 0 : i32
    %c0_i32_0 = arith.constant 0 : i32
    %c0_i32_1 = arith.constant 0 : i32
    return %arg0, %c0_i32, %c0_i32_0 : i32, i32, i32
  }
  func.func @transform_1(%arg0: i32) -> (i32, i32, i32) {
    %c0_i32 = arith.constant 0 : i32
    %c0_i32_0 = arith.constant 0 : i32
    %c0_i32_1 = arith.constant 0 : i32
    return %arg0, %c0_i32, %c0_i32_0 : i32, i32, i32
  }
}

</mosaic_0001>

<bundles_post_ra>
// kernel: tpu_custom_call.1
= control target key start
LH: loop header
LB: loop body
LE: loop exit
PB: predicated region body
PF: predicated region fallthrough
CT: control target
= control target key end

     0   :  { %6 = vsyncpa [#allocation3], 0  ;;  %s713_s0 = inlined_call_operand.hbm [shape: f32[8,16,16], index: 0, kind: input, shape index: {}]   ;;  %s714_s1 = inlined_call_operand.hbm [shape: f32[8,16,16], index: 1, kind: output, shape index: {}]  }
   0x1   :  { %8 = vsyncpa [#allocation3 + $0x1], 0 }
   0x2   :  { %9 = vsyncpa [#allocation4], 0 }
   0x3   :  { %11 = vsyncpa [#allocation4 + $0x1], 0  ;;  %s549_s6 = smov 0   ;;  %s551_s7 = smov 0  }
   0x4   :  { %s553_s8 = smov 0   ;;  %s555_s9 = smov 0  }
   0x5 LB: > { %s570_s10 = sadd.s32 4294967295, %s525_s9   ;;  %s354_s11 = sadd.s32 4294967294, %s525_s9   ;;  %s525_s9 = sphi %s555_s9, %s726_s9   ;;  %s521_s8 = sphi %s553_s8, %s725_s8   ;;  %s517_s7 = sphi %s551_s7, %s724_s7   ;;  %s513_s6 = sphi %s549_s6, %s723_s6  }
   0x6   : > { %s574_s12 = sadd.s32 1, %s525_s9   ;;  %s24_s13 = sadd.s32 1, %s521_s8 }
   0x7   : > { %s21_s14 = ssub.s32 %s525_s9, %s574_s12  ;;  %p31_p0 = scmp.ne.s32.totalorder %s521_s8, %s517_s7 }
   0x8   : > { %p22_p1 = scmp.eq.s32.totalorder %s21_s14, 0  ;;  %p32_p2 = scmp.eq.s32.totalorder %s525_s9, 0 }
   0x9   : > { %p37_p3 = scmp.ne.s32.totalorder %s517_s7, %s513_s6  ;;  %p38_p4 = scmp.eq.s32.totalorder %s570_s10, 0 }
   0xa   : > { %s586_s15 = scalar_select %p22_p1, %s521_s8, %s24_s13  }
   0xb   : > { %p588_p5 = por %p32_p2, %p31_p0  ;;  %p592_p6 = por %p38_p4, %p37_p3 }
   0xc   : > { %p61_p7 = scmp.eq.s32.totalorder %s570_s10, 7  ;;  %p67_p8 = scmp.eq.s32.totalorder %s354_s11, 7 }
   0xd   : > { %p382_p9 = scmp.lt.s32.totalorder %s525_s9, 8  ;;  %s87_s20 = sand.u32 1, %s521_s8  }
   0xe   : > { %p598_p10 = por %p61_p7, %p31_p0  ;;  %p602_p11 = por %p67_p8, %p37_p3 }
   0xf   : > { %s368_s21 = sshll.u32 %s525_s9, 8  ;;  %s357_s22 = sshll.u32 %s87_s20, 4 }
  0x10   : > { %s718_s18 = scalar_select %p598_p10, 1, 0 }
  0x11   : > { %s719_s19 = scalar_select %p602_p11, 1, 0 }
  0x12   : > { %s611_s25 = scalar_lea.hbm %s713_s0, %s368_s21  ;;  %s91_s26 = scalar_lea.vmem [#allocation2], %s357_s22 }
  0x13   : > { %s98_s27 = sshll.u32 %s91_s26, 4  ;;  %p615_p12 = pnand %p382_p9, %p588_p5  ;;  %s619_s27 = int_to_ptr.vmem [resolvable:$true] %s98_s27 }
  0x14   : > { %s621_s29 = scalar_lea.sflag [#allocation3], %s87_s20  ;;  %s429_s30 = scalar_lea.hbm %s611_s25, 256 }
  0x15   : > { %p430_p13 = scmp.ne.s32.totalorder %s611_s25, %s429_s30  ;;  %p431_p0 = pneg %p615_p12 }
  0x16   : > { %s434_s4 = scalar_lea.hbm %s713_s0, 2048  ;;  %p435_p3 = scmp.lt.u32.totalorder %s611_s25, %s713_s0 }
  0x17   : > { %p432_p1 = pnand %p431_p0, %p430_p13  ;;  %p436_p4 = scmp.lt.u32.totalorder %s434_s4, %s429_s30 }
  0x18   : > { %p438_p7 = scmp.lt.u32.totalorder %s429_s30, %s611_s25 }
  0x19   : > { %p433_p2 = pneg %p432_p1  ;;  %p437_p5 = por %p436_p4, %p435_p3 }
  0x1b   : > { %p439_p8 = por %p438_p7, %p437_p5 }
  0x1d   : > { %p440_p9 = pnand %p439_p8, %p433_p2 }
  0x1f   : > { %443 = shalt.err (!%p440_p9)
}
  0x20   : > { %s444_s13 = scalar_lea.vmem %s619_s27, 256  ;;  %s527_s14 = smov [#allocation2]  }
  0x21   : > { %p445_p13 = scmp.ne.s32.totalorder %s619_s27, %s444_s13  ;;  %s449_s16 = sshll.u32 %s527_s14, 4  ;;  %s450_s16 = int_to_ptr.vmem [resolvable:$false] %s449_s16 }
  0x22   : > { %s451_s20 = scalar_lea.vmem %s450_s16, 512  ;;  %p452_p10 = scmp.lt.s32.totalorder %s619_s27, %s450_s16 }
  0x23   : > { %p447_p1 = pnand %p445_p13, %p431_p0  ;;  %p453_p3 = scmp.lt.s32.totalorder %s451_s20, %s444_s13 }
  0x25   : > { %p448_p11 = pneg %p447_p1  ;;  %p454_p4 = por %p453_p3, %p452_p10 }
  0x27   : > { %p455_p5 = pnand %p454_p4, %p448_p11 }
  0x29   : > { %458 = shalt.err (!%p455_p5)
}
  0x2a   : > { %s528_s21 = smov 128   ;;  %s529_s22 = smov 8  }
  0x2b   : > { %377 = dma.hbm_to_vmem [thread:$0]  (!%p615_p12), %s611_s25, 256, %s619_s27, %s621_s29, %s528_s21, %s528_s21, %s529_s22  }
  0x2c   : > { %p360_p0 = scmp.ge.s32.totalorder %s525_s9, 1  ;;  %p106_p2 = scmp.lt.s32.totalorder %s525_s9, 9 }
  0x2e   : > { %p107_p7 = pnand %p360_p0, %p106_p2 }
  0x2f   : > { %s652_s23 = sand.u32 (!%p107_p7), 1, %s517_s7  }
  0x30   : > { %110 = sbr.rel (%p107_p7) target bundleno = 241 (0xf1), region = 24  ;;  %s361_s24 = sshll.u32 (!%p107_p7), %s652_s23, 4 }
  0x31   : > { %s113_s26 = scalar_lea.sflag (!%p107_p7), [#allocation3], %s652_s23  ;;  %s116_s30 = scalar_lea.vmem (!%p107_p7), [#allocation2], %s361_s24 }
  0x37   : > { %504 = dma.done.wait (%p592_p6), %s113_s26, 256  }
  0x38   : > { %506 = vsyncadd (%p592_p6), %s113_s26, 4294967040  ;;  %v530_v0 = vmov 14   ;;  %v531_v1 = vmov 1   ;;  %v136_v2 = vld [vmem:[%s116_s30 + $0x8] sm:$0xff]  ;;  %v135_v3 = vld [vmem:[%s116_s30] sm:$0xff]  ;;  %s532_s25 = smov 127   ;;  %v139_v14 = vlaneseq }
  0x39   : > { %427 = vset.pattern.permute.xlu1 %v530_v0  ;;  %426 = vset.pattern.permute.xlu0 %v531_v1  ;;  %v175_v4 = vadd.f32 %v135_v3, %v135_v3  ;;  %v176_v5 = vadd.f32 %v136_v2, %v136_v2  ;;  %s533_s27 = smov 15   ;;  %s534_s17 = smov 113   ;;  %vm155_vm0 = vcmask 121856   ;;  %vm170_vm1 = vcmask 7168  }
  0x3a   : > { %145 = vrot.lane.b32.xlu1 %v136_v2, %s532_s25  ;;  %143 = vrot.lane.b32.xlu0 %v135_v3, %s532_s25  ;;  %s535_s28 = smov 1   ;;  %v140_v17 = vand.u32 127, %v139_v14  ;;  %v138_v26 = vmul.f32 0.52201146, %v136_v2  ;;  %v212_v27 = vshrl.u32 %v139_v14, 7  ;;  %vm216_vm4 = vcmask 1046528  }
  0x3b   : > { %v137_v29 = vmul.f32 0.52201146, %v135_v3  ;;  %vm226_vm5 = vcmask 1040384   ;;  %s369_s29 = sshll.u32 %s570_s10, 8  ;;  %s134_s2 = scalar_lea.vmem [#allocation5], %s361_s24  ;;  %vm264_vm8 = vcmask 130048  }
  0x3c   : > { %vm177_vm2 = vcmp.eq.s32.totalorder %v140_v17, 0  ;;  %vm192_vm3 = vcmp.eq.s32.totalorder %v140_v17, 15  ;;  %v213_v35 = vadd.s32 8, %v212_v27  ;;  %v256_v36 = vsub.s32 6, %v212_v27  ;;  %s281_s3 = sshll.u32 %s134_s2, 4  ;;  %s668_s11 = scalar_lea.hbm %s714_s1, %s369_s29  ;;  %s670_s3 = int_to_ptr.vmem [resolvable:$true] %s281_s3 }
  0x3d   : > { %v243_v39 = vsub.s32 1, %v212_v27  ;;  %vm235_vm6 = vcmp.eq.s32.totalorder %v212_v27, 0  ;;  %s268_s10 = scalar_lea.sflag [#allocation4], %s652_s23  ;;  %s459_s13 = scalar_lea.vmem %s670_s3, 256 }
  0x3e   : > { %196 = vperm.xlu1 %427, %v175_v4   ;;  %182 = vperm.xlu0 %426, %v175_v4   ;;  %vm249_vm7 = vcmp.eq.s32.totalorder %v213_v35, 15  ;;  %p460_p6 = scmp.ne.s32.totalorder %s670_s3, %s459_s13  ;;  %p721_p10 = scmp.ne.s32.totalorder %s718_s18, 0 }
  0x3f   : > { %s536_s14 = smov [#allocation5]  }
  0x40   : > { %p461_p11 = pnand %p460_p6, %p721_p10  ;;  %s463_s16 = sshll.u32 %s536_s14, 4  ;;  %s464_s16 = int_to_ptr.vmem [resolvable:$false] %s463_s16 }
  0x41   : > { %s465_s20 = scalar_lea.vmem %s464_s16, 512  ;;  %p466_p8 = scmp.lt.s32.totalorder %s670_s3, %s464_s16 }
  0x42   : > { %200 = vperm.xlu1 %427, %v176_v5   ;;  %187 = vperm.xlu0 %426, %v176_v5   ;;  %p462_p12 = pneg %p461_p11  ;;  %p467_p9 = scmp.lt.s32.totalorder %s465_s20, %s459_s13 }
  0x44   : > { %p468_p13 = por %p467_p9, %p466_p8 }
  0x46   : > { %151 = vrot.lane.b32.xlu1 %v136_v2, %s533_s27  ;;  %149 = vrot.lane.b32.xlu0 %v135_v3, %s533_s27  ;;  %p469_p1 = pnand %p468_p13, %p462_p12 }
  0x47   : > { %428 = vset.pattern.permute.xlu0 %v530_v0 }
  0x4a   : > { %160 = vrot.lane.b32.xlu1 %v136_v2, %s534_s17  ;;  %158 = vrot.lane.b32.xlu0 %v135_v3, %s534_s17 }
  0x4e   : > { %166 = vrot.lane.b32.xlu1 %v136_v2, %s535_s28  ;;  %164 = vrot.lane.b32.xlu0 %v135_v3, %s535_s28 }
  0xac   : > { %v146_v6 = vpop.permute.xlu1 %145  ;;  %v144_v7 = vpop.permute.xlu0 %143 }
  0xbd   : > { %v197_v8 = vpop.permute.xlu1 %196  ;;  %v183_v9 = vpop.permute.xlu0 %182 }
  0xc1   : > { %v201_v10 = vpop.permute.xlu1 %200  ;;  %v188_v11 = vpop.permute.xlu0 %187 }
  0xc5   : > { %v152_v12 = vpop.permute.xlu1 %151  ;;  %v150_v13 = vpop.permute.xlu0 %149 }
  0xc6   : > { %v157_v20 = vsel %vm155_vm0, %v146_v6, %v152_v12  ;;  %v156_v21 = vsel %vm155_vm0, %v144_v7, %v150_v13 }
  0xc9   : > { %v161_v15 = vpop.permute.xlu1 %160  ;;  %v159_v16 = vpop.permute.xlu0 %158 }
  0xcd   : > { %v167_v18 = vpop.permute.xlu1 %166  ;;  %v165_v19 = vpop.permute.xlu0 %164 }
  0xce   : > { %v172_v22 = vsel %vm170_vm1, %v161_v15, %v167_v18  ;;  %v171_v23 = vsel %vm170_vm1, %v159_v16, %v165_v19 }
  0xcf   : > { %v174_v24 = vadd.f32 %v172_v22, %v157_v20  ;;  %v173_v25 = vadd.f32 %v171_v23, %v156_v21 }
  0xd1   : > { %v191_v28 = vsel %vm177_vm2, %v188_v11, %v174_v24  ;;  %v190_v30 = vsel %vm177_vm2, %v183_v9, %v173_v25 }
  0xd2   : > { %v204_v31 = vsel %vm192_vm3, %v201_v10, %v191_v28  ;;  %v203_v32 = vsel %vm192_vm3, %v197_v8, %v190_v30 }
  0xd3   : > { %v206_v33 = vmul.f32 0.23899427, %v204_v31  ;;  %v205_v34 = vmul.f32 0.23899427, %v203_v32 }
  0xd5   : > { %v208_v37 = vadd.f32 %v206_v33, %v138_v26  ;;  %v207_v38 = vadd.f32 %v205_v34, %v137_v29 }
  0xd7   : > { %v218_v40 = vrot.slane %v208_v37, 1  ;;  %v224_v41 = vrot.slane %v208_v37, 7  ;;  %v247_v42 = vadd.f32 %v208_v37, %v208_v37  ;;  %v217_v43 = vrot.slane %v207_v38, 1 }
  0xd8   : > { %v227_v44 = vrot.slane %v207_v38, 7  ;;  %v234_v45 = vadd.f32 %v207_v38, %v207_v38  ;;  %v210_v54 = vmul.f32 0.52201146, %v208_v37  ;;  %v209_v57 = vmul.f32 0.52201146, %v207_v38 }
  0xd9   : > { %v257_v46 = vrot.slane %v247_v42, %v256_v36  ;;  %v219_v47 = vsel %vm216_vm4, %v217_v43, %v218_v40  ;;  %v223_v48 = vsel %vm216_vm4, %v218_v40, %v217_v43 }
  0xda   : > { %v228_v49 = vsel %vm226_vm5, %v227_v44, %v224_v41  ;;  %v231_v50 = vsel %vm226_vm5, %v224_v41, %v227_v44  ;;  %v244_v53 = vrot.slane %v234_v45, %v243_v39 }
  0xdb   : > { %v232_v51 = vadd.f32 %v231_v50, %v219_v47  ;;  %v233_v52 = vadd.f32 %v228_v49, %v223_v48 }
  0xdd   : > { %v245_v55 = vsel %vm235_vm6, %v244_v53, %v232_v51  ;;  %v259_v56 = vsel %vm249_vm7, %v257_v46, %v233_v52 }
  0xde   : > { %v260_v58 = vmul.f32 0.23899427, %v245_v55  ;;  %v261_v59 = vmul.f32 0.23899427, %v259_v56 }
  0xe0   : > { %v262_v60 = vadd.f32 %v260_v58, %v209_v57  ;;  %v263_v61 = vadd.f32 %v261_v59, %v210_v54 }
  0xe2   : > { %265 = vst.msk [vmem:[%s134_s2] sm:$0xff] %vm264_vm8, %v262_v60  ;;  %266 = vst.msk [vmem:[%s134_s2 + $0x8] sm:$0xff] %vm264_vm8, %v263_v61 }
  0xe3   : > { %472 = shalt.err (!%p469_p1)
}
  0xe4   : > { %s473_s21 = scalar_lea.hbm %s668_s11, 256  ;;  %s477_s26 = scalar_lea.hbm %s714_s1, 2048 }
  0xe5   : > { %p474_p3 = scmp.ne.s32.totalorder %s668_s11, %s473_s21  ;;  %p478_p0 = scmp.lt.u32.totalorder %s668_s11, %s714_s1 }
  0xe6   : > { %p479_p2 = scmp.lt.u32.totalorder %s477_s26, %s473_s21  ;;  %p481_p6 = scmp.lt.u32.totalorder %s473_s21, %s668_s11 }
  0xe7   : > { %p475_p4 = pnand %p474_p3, %p721_p10 }
  0xe8   : > { %p480_p7 = por %p479_p2, %p478_p0 }
  0xe9   : > { %p476_p5 = pneg %p475_p4 }
  0xea   : > { %p482_p11 = por %p481_p6, %p480_p7 }
  0xec   : > { %p483_p12 = pnand %p482_p11, %p476_p5 }
  0xee   : > { %486 = shalt.err (!%p483_p12)
}
  0xef   : > { %s537_s27 = smov 128   ;;  %s538_s17 = smov 8  }
  0xf0   : > { %372 = dma.vmem_to_hbm [thread:$0]  (%p721_p10), %s670_s3, 256, %s668_s11, %s268_s10, %s537_s27, %s537_s27, %s538_s17  }
  0xf1 PF: > { %p383_p8 = scmp.ge.s32.totalorder %s525_s9, 2  ;;  %s296_s28 = sand.u32 1, %s513_s6  }
  0xf2   : > { %p722_p9 = scmp.ne.s32.totalorder %s719_s19, 0  ;;  %s297_s29 = scalar_lea.sflag [#allocation4], %s296_s28 }
  0xf4   : > { %p379_p13 = pnand %p383_p8, %p722_p9 }
  0xf6   : > { %508 = dma.done.wait (!%p379_p13), %s297_s29, 256  }
  0xf7   : > { %510 = vsyncadd (!%p379_p13), %s297_s29, 4294967040  ;;  %p14_p1 = scmp.ge.s32.totalorder %s574_s12, 10   ;;  %s723_s6 = smov %s517_s7 }
  0xf8   : > { %s724_s7 = smov %s521_s8  ;;  %s725_s8 = smov %s586_s15 }
  0xf9   : > { %s726_s9 = smov %s574_s12  ;;  %16 = sbr.rel (!%p14_p1) target bundleno = 5 (0x5), region = 69 }
 0x100   :  { %302 = vsyncpa [#allocation3], 1 }
 0x101   :  { %304 = vsyncpa [#allocation3 + $0x1], 1 }
 0x102   :  { %305 = vsyncpa [#allocation4], 1 }
 0x103   :  { %307 = vsyncpa [#allocation4 + $0x1], 1 }

</bundles_post_ra>
